<compile_context>
chip_gen: v7x
topology: tpu7x:2x2x1
jax: 0.10.0
libtpu: 0.0.40
codegen_flags: <defaults>
</compile_context>

<pallas_src>
import functools
import math

import jax
import jax.numpy as jnp
from jax.experimental import pallas as pl
from jax.experimental.pallas import tpu as pltpu

RMSNORM_EPS = 1e-6            # RMSNorm eps (weight initialized to ones, as in the reference repo)
_INV_SQRT2 = 1.0 / math.sqrt(2.0)
_LANE = 128


def _gate_kernel(tau_ref,                       # SMEM scalar: temperature
                 x1_ref, x2_ref,                # (1, TN, D) bf16 tiles
                 w1_ref, b1_ref, g1_ref,        # fc1: (D, D) bf16, (1, D) f32, (1, D) f32
                 w2_ref, b2_ref, g2_ref,        # fc2
                 wc_ref, bc_ref,                # classifier: (D, K_pad) f32, (1, K_pad) f32
                 ysoft_ref,                     # out: (1, 1, K_pad) f32
                 acc_ref,                       # scratch: (1, D) f32 running token-sum
                 *, seq_len):
    """Per grid step: fc1/fc2 (Linear -> RMSNorm -> GELU) on a token tile, accumulate the
    per-batch token sum; on the last sequence tile: mean, classifier, softmax."""
    j = pl.program_id(1)

    @pl.when(j == 0)
    def _init():
        acc_ref[...] = jnp.zeros_like(acc_ref)

    def branch(x_bf16, w_ref, b_ref, g_ref):
        # Linear on the MXU: bf16 x bf16 -> f32 accumulate.
        h = jnp.dot(x_bf16, w_ref[...], preferred_element_type=jnp.float32) + b_ref[...]
        # RMSNorm over the feature (lane) axis.
        ms = jnp.mean(h * h, axis=-1, keepdims=True)
        h = h * jax.lax.rsqrt(ms + RMSNORM_EPS) * g_ref[...]
        # Exact (erf-based) GELU, matching nn.GELU() default.
        return 0.5 * h * (1.0 + jax.lax.erf(h * _INV_SQRT2))

    h1 = branch(x1_ref[0], w1_ref, b1_ref, g1_ref)          # (TN, D) f32
    h2 = branch(x2_ref[0], w2_ref, b2_ref, g2_ref)          # (TN, D) f32

    # mean(h1, dim=1) + mean(h2, dim=1) == sum(h1 + h2) / N  -> accumulate the sum.
    acc_ref[...] += jnp.sum(h1 + h2, axis=0, keepdims=True)  # (1, D) XLU reduction

    @pl.when(j == pl.num_programs(1) - 1)
    def _finalize():
        xm = acc_ref[...] * (1.0 / seq_len)                                  # (1, D) f32
        logits = jnp.dot(xm, wc_ref[...],
                         preferred_element_type=jnp.float32) + bc_ref[...]   # (1, K_pad)
        scaled = logits * (1.0 / tau_ref[0])
        m = jnp.max(scaled, axis=-1, keepdims=True)
        e = jnp.exp(scaled - m)                # padded columns carry -1e30 bias -> exp ~ 0
        ysoft_ref[0] = (e / jnp.sum(e, axis=-1, keepdims=True)).astype(ysoft_ref.dtype)


def _seq_tile(n, max_tile=512):
    """Largest multiple-of-8 divisor of n (<= max_tile); fall back to n (full sequence)."""
    if n % 8 != 0:
        return n
    t = min(max_tile, n)
    t -= t % 8
    while t > 8 and n % t != 0:
        t -= 8
    return max(t, 8)


@functools.partial(jax.jit, static_argnames=("hard", "top_k"))
def mlp_gate_forward(params, x1, x2, temp=1.0, hard=False, top_k=None):
    """Mirrors MLP_Gate.forward(x1, x2, temp, hard, top_k)."""
    B, N, D = x1.shape
    K = params["wc"].shape[1]
    K_pad = max(_LANE, ((K + _LANE - 1) // _LANE) * _LANE)   # lane-dense classifier width
    TN = _seq_tile(N)
    grid = (B, N // TN)

    # bf16 feeds for the MXU (halves HBM traffic / VMEM for the big operands).
    x1b = x1.astype(jnp.bfloat16)
    x2b = x2.astype(jnp.bfloat16)
    w1b = params["w1"].astype(jnp.bfloat16)
    w2b = params["w2"].astype(jnp.bfloat16)

    # Classifier kept in f32 (runs once per batch row; precision of the gate logits matters).
    wc_pad = jnp.zeros((D, K_pad), jnp.float32).at[:, :K].set(params["wc"])
    bc_pad = jnp.full((1, K_pad), -1e30, jnp.float32).at[:, :K].set(params["bc"])

    tau = jnp.asarray(temp, jnp.float32).reshape((1,))       # runtime scalar -> SMEM

    # VMEM budget: resident bf16 weights + f32 classifier + double-buffered input tiles
    # + accumulator + output block.  Clamp to stay within every generation's scoped limit.
    est = (2 * D * D * 2                  # w1, w2 (bf16, resident)
           + D * K_pad * 4 + K_pad * 4    # wc, bc (f32, resident)
           + 4 * D * 4                    # b1, g1, b2, g2
           + 2 * 2 * TN * D * 2           # x1/x2 tiles, double-buffered, bf16
           + D * 4                        # (1, D) accumulator
           + 2 * K_pad * 4)               # output block
    vmem_limit = int(min(max(4 * est, 16 * 1024 * 1024), 64 * 1024 * 1024))

    resident2d = lambda i, j: (0, 0)

    y_full = pl.pallas_call(
        functools.partial(_gate_kernel, seq_len=N),
        out_shape=jax.ShapeDtypeStruct((B, 1, K_pad), jnp.float32),
        grid=grid,
        in_specs=[
            pl.BlockSpec(memory_space=pltpu.MemorySpace.SMEM),      # tau (scalar)
            pl.BlockSpec((1, TN, D), lambda i, j: (i, j, 0)),       # x1 tile
            pl.BlockSpec((1, TN, D), lambda i, j: (i, j, 0)),       # x2 tile
            pl.BlockSpec((D, D), resident2d),                       # w1
            pl.BlockSpec((1, D), resident2d),                       # b1
            pl.BlockSpec((1, D), resident2d),                       # g1
            pl.BlockSpec((D, D), resident2d),                       # w2
            pl.BlockSpec((1, D), resident2d),                       # b2
            pl.BlockSpec((1, D), resident2d),                       # g2
            pl.BlockSpec((D, K_pad), resident2d),                   # wc (padded)
            pl.BlockSpec((1, K_pad), resident2d),                   # bc (padded)
        ],
        out_specs=pl.BlockSpec((1, 1, K_pad), lambda i, j: (i, 0, 0)),
        scratch_shapes=[pltpu.VMEM((1, D), jnp.float32)],           # per-batch token-sum
        compiler_params=pltpu.CompilerParams(
            dimension_semantics=("parallel", "arbitrary"),
            vmem_limit_bytes=vmem_limit),
    )(tau, x1b, x2b,
      w1b, params["b1"], params["g1"],
      w2b, params["b2"], params["g2"],
      wc_pad, bc_pad)

    y_soft = y_full[:, 0, :K]                                       # drop lane padding

    if hard:
        # Forward value of (y_hard - y_soft.detach() + y_soft) is the one-hot y_hard.
        idx = jnp.argmax(y_soft, axis=-1)
        y_hard = jax.nn.one_hot(idx, K, dtype=y_soft.dtype)
        logits = y_hard - jax.lax.stop_gradient(y_soft) + y_soft
    else:
        logits = y_soft

    if top_k is not None:
        _, top_k_indices = jax.lax.top_k(y_soft, top_k)
        return top_k_indices
    return logits, y_soft


def init_params(key, dim, branch_num):
    """Deterministic PyTorch-Linear-style init; weights stored as (in, out), f32."""
    ks = jax.random.split(key, 6)
    bound = 1.0 / math.sqrt(dim)

    def lin(kw, kb, din, dout):
        w = jax.random.uniform(kw, (din, dout), jnp.float32, -bound, bound)
        b = jax.random.uniform(kb, (1, dout), jnp.float32, -bound, bound)
        return w, b

    w1, b1 = lin(ks[0], ks[1], dim, dim)
    w2, b2 = lin(ks[2], ks[3], dim, dim)
    wc, bc = lin(ks[4], ks[5], dim, branch_num)
    return dict(
        w1=w1, b1=b1, g1=jnp.ones((1, dim), jnp.float32),
        w2=w2, b2=b2, g2=jnp.ones((1, dim), jnp.float32),
        wc=wc, bc=bc,
    )


def reference_forward(params, x1, x2, temp=1.0):
    """Pure-JAX f32 reference of the PyTorch forward (hard=False, top_k=None)."""
    def branch(x, w, b, g):
        h = x @ w + b[0]
        h = h * jax.lax.rsqrt(jnp.mean(h * h, -1, keepdims=True) + RMSNORM_EPS) * g[0]
        return jax.nn.gelu(h, approximate=False)

    h1 = branch(x1, params["w1"], params["b1"], params["g1"])
    h2 = branch(x2, params["w2"], params["b2"], params["g2"])
    x = h1.mean(axis=1) + h2.mean(axis=1)
    logits = x @ params["wc"] + params["bc"][0]
    y = jax.nn.softmax(logits / temp, axis=-1)
    return y, y


if __name__ == "__main__":
    # Small shapes consistent with the module (default dim=256 in MLP_Gate), lane-dense D.
    B, N, D, BRANCH = 2, 8, 256, 4
    key = jax.random.PRNGKey(0)
    k1, k2, kp = jax.random.split(key, 3)
    x1 = jax.random.normal(k1, (B, N, D), dtype=jnp.float32)
    x2 = jax.random.normal(k2, (B, N, D), dtype=jnp.float32)
    params = init_params(kp, D, BRANCH)

    logits, y_soft = mlp_gate_forward(params, x1, x2, temp=1.0, hard=False)
    jax.block_until_ready((logits, y_soft))

    ref_logits, ref_y = reference_forward(params, x1, x2, temp=1.0)
    # bf16 MXU feeds -> relaxed tolerance vs the f32 reference.
    assert jnp.allclose(y_soft, ref_y, atol=1e-2), "mismatch vs pure-JAX reference (temp=1.0)"
    assert jnp.allclose(jnp.sum(y_soft, axis=-1), 1.0, atol=1e-5)

    # Runtime temperature (no recompile: tau is an SMEM scalar input).
    _, y_soft2 = mlp_gate_forward(params, x1, x2, temp=2.0, hard=False)
    jax.block_until_ready(y_soft2)
    _, ref_y2 = reference_forward(params, x1, x2, temp=2.0)
    assert jnp.allclose(y_soft2, ref_y2, atol=1e-2), "mismatch vs pure-JAX reference (temp=2.0)"
    assert jnp.allclose(jnp.sum(y_soft2, axis=-1), 1.0, atol=1e-5)

    print("KERNEL_OK")
</pallas_src>

<mosaic_0001>
module attributes {stable_mosaic.version = 11 : i64} {
  func.func @_gate_kernel(%arg0: i32, %arg1: i32, %arg2: memref<1xf32, #tpu.memory_space<smem>>, %arg3: memref<1x8x256xbf16, #tpu.memory_space<vmem>>, %arg4: memref<1x8x256xbf16, #tpu.memory_space<vmem>>, %arg5: memref<256x256xbf16, #tpu.memory_space<vmem>>, %arg6: memref<1x256xf32, #tpu.memory_space<vmem>>, %arg7: memref<1x256xf32, #tpu.memory_space<vmem>>, %arg8: memref<256x256xbf16, #tpu.memory_space<vmem>>, %arg9: memref<1x256xf32, #tpu.memory_space<vmem>>, %arg10: memref<1x256xf32, #tpu.memory_space<vmem>>, %arg11: memref<256x128xf32, #tpu.memory_space<vmem>>, %arg12: memref<1x128xf32, #tpu.memory_space<vmem>>, %arg13: memref<1x1x128xf32, #tpu.memory_space<vmem>>, %arg14: memref<1x256xf32, #tpu.memory_space<vmem>>) attributes {dimension_semantics = [#tpu.dimension_semantics<parallel>, #tpu.dimension_semantics<arbitrary>], iteration_bounds = array<i64: 2, 1>, scalar_prefetch = 0 : i64, scratch_operands = 1 : i64, tpu.core_type = #tpu.core_type<tc>, window_params = [{transform_indices = @transform_0, window_bounds = array<i64: 1>}, {transform_indices = @transform_1, window_bounds = array<i64: 1, 8, 256>}, {transform_indices = @transform_2, window_bounds = array<i64: 1, 8, 256>}, {pipeline_mode = #tpu.pipeline_mode<synchronous>, transform_indices = @transform_3, window_bounds = array<i64: 256, 256>}, {pipeline_mode = #tpu.pipeline_mode<synchronous>, transform_indices = @transform_4, window_bounds = array<i64: 1, 256>}, {pipeline_mode = #tpu.pipeline_mode<synchronous>, transform_indices = @transform_5, window_bounds = array<i64: 1, 256>}, {pipeline_mode = #tpu.pipeline_mode<synchronous>, transform_indices = @transform_6, window_bounds = array<i64: 256, 256>}, {pipeline_mode = #tpu.pipeline_mode<synchronous>, transform_indices = @transform_7, window_bounds = array<i64: 1, 256>}, {pipeline_mode = #tpu.pipeline_mode<synchronous>, transform_indices = @transform_8, window_bounds = array<i64: 1, 256>}, {pipeline_mode = #tpu.pipeline_mode<synchronous>, transform_indices = @transform_9, window_bounds = array<i64: 256, 128>}, {pipeline_mode = #tpu.pipeline_mode<synchronous>, transform_indices = @transform_10, window_bounds = array<i64: 1, 128>}, {transform_indices = @transform_11, window_bounds = array<i64: 1, 1, 128>}]} {
    %c0_i32 = arith.constant 0 : i32
    %0 = arith.cmpi eq, %arg1, %c0_i32 : i32
    %1 = arith.extui %0 : i1 to i32
    %c0_i32_0 = arith.constant 0 : i32
    %2 = arith.cmpi ne, %1, %c0_i32_0 : i32
    scf.if %2 {
      %cst_38 = arith.constant 0.000000e+00 : f32
      %68 = vector.broadcast %cst_38 : f32 to vector<1x256xf32>
      %c0_39 = arith.constant 0 : index
      %c0_40 = arith.constant 0 : index
      %69 = vector.load %arg14[%c0_39, %c0_40] : memref<1x256xf32, #tpu.memory_space<vmem>>, vector<1x256xf32>
      tpu.vector_store %arg14[%c0_39, %c0_40], %68 {strides = array<i32>} : memref<1x256xf32, #tpu.memory_space<vmem>>, vector<1x256xf32>,
    } else {
    }
    %c0 = arith.constant 0 : index
    %c0_1 = arith.constant 0 : index
    %c0_2 = arith.constant 0 : index
    %3 = vector.load %arg3[%c0, %c0_1, %c0_2] : memref<1x8x256xbf16, #tpu.memory_space<vmem>>, vector<1x8x256xbf16>
    %4 = vector.shape_cast %3 : vector<1x8x256xbf16> to vector<8x256xbf16>
    %c0_3 = arith.constant 0 : index
    %c0_4 = arith.constant 0 : index
    %5 = vector.load %arg5[%c0_3, %c0_4] : memref<256x256xbf16, #tpu.memory_space<vmem>>, vector<256x256xbf16>
    %cst = arith.constant dense<0.000000e+00> : vector<8x256xf32>
    %6 = tpu.matmul %4, %5, %cst {dimension_numbers = #tpu.dot_dimension_numbers<[1], [0], [0], [1], [0, 0, 1, 1], [], []>} : vector<8x256xbf16>, vector<256x256xbf16>, vector<8x256xf32> -> vector<8x256xf32>
    %c0_5 = arith.constant 0 : index
    %c0_6 = arith.constant 0 : index
    %7 = vector.load %arg6[%c0_5, %c0_6] : memref<1x256xf32, #tpu.memory_space<vmem>>, vector<1x256xf32>
    %8 = vector.broadcast %7 : vector<1x256xf32> to vector<8x256xf32>
    %9 = arith.addf %6, %8 : vector<8x256xf32>
    %10 = arith.mulf %9, %9 : vector<8x256xf32>
    %cst_7 = arith.constant dense<0.000000e+00> : vector<8xf32>
    %11 = vector.multi_reduction <add>, %10, %cst_7 [1] : vector<8x256xf32> to vector<8xf32>
    %12 = vector.shape_cast %11 : vector<8xf32> to vector<8x1xf32>
    %cst_8 = arith.constant 2.560000e+02 : f32
    %13 = vector.broadcast %cst_8 : f32 to vector<8x1xf32>
    %14 = arith.divf %12, %13 : vector<8x1xf32>
    %cst_9 = arith.constant 9.99999997E-7 : f32
    %15 = vector.broadcast %cst_9 : f32 to vector<8x1xf32>
    %16 = arith.addf %14, %15 : vector<8x1xf32>
    %17 = math.rsqrt %16 : vector<8x1xf32>
    %18 = vector.broadcast %17 : vector<8x1xf32> to vector<8x256xf32>
    %19 = arith.mulf %9, %18 : vector<8x256xf32>
    %c0_10 = arith.constant 0 : index
    %c0_11 = arith.constant 0 : index
    %20 = vector.load %arg7[%c0_10, %c0_11] : memref<1x256xf32, #tpu.memory_space<vmem>>, vector<1x256xf32>
    %21 = vector.broadcast %20 : vector<1x256xf32> to vector<8x256xf32>
    %22 = arith.mulf %19, %21 : vector<8x256xf32>
    %cst_12 = arith.constant 5.000000e-01 : f32
    %23 = vector.broadcast %cst_12 : f32 to vector<8x256xf32>
    %24 = arith.mulf %23, %22 : vector<8x256xf32>
    %cst_13 = arith.constant 0.707106769 : f32
    %25 = vector.broadcast %cst_13 : f32 to vector<8x256xf32>
    %26 = arith.mulf %22, %25 : vector<8x256xf32>
    %27 = math.erf %26 : vector<8x256xf32>
    %cst_14 = arith.constant 1.000000e+00 : f32
    %28 = vector.broadcast %cst_14 : f32 to vector<8x256xf32>
    %29 = arith.addf %28, %27 : vector<8x256xf32>
    %30 = arith.mulf %24, %29 : vector<8x256xf32>
    %c0_15 = arith.constant 0 : index
    %c0_16 = arith.constant 0 : index
    %c0_17 = arith.constant 0 : index
    %31 = vector.load %arg4[%c0_15, %c0_16, %c0_17] : memref<1x8x256xbf16, #tpu.memory_space<vmem>>, vector<1x8x256xbf16>
    %32 = vector.shape_cast %31 : vector<1x8x256xbf16> to vector<8x256xbf16>
    %c0_18 = arith.constant 0 : index
    %c0_19 = arith.constant 0 : index
    %33 = vector.load %arg8[%c0_18, %c0_19] : memref<256x256xbf16, #tpu.memory_space<vmem>>, vector<256x256xbf16>
    %cst_20 = arith.constant dense<0.000000e+00> : vector<8x256xf32>
    %34 = tpu.matmul %32, %33, %cst_20 {dimension_numbers = #tpu.dot_dimension_numbers<[1], [0], [0], [1], [0, 0, 1, 1], [], []>} : vector<8x256xbf16>, vector<256x256xbf16>, vector<8x256xf32> -> vector<8x256xf32>
    %c0_21 = arith.constant 0 : index
    %c0_22 = arith.constant 0 : index
    %35 = vector.load %arg9[%c0_21, %c0_22] : memref<1x256xf32, #tpu.memory_space<vmem>>, vector<1x256xf32>
    %36 = vector.broadcast %35 : vector<1x256xf32> to vector<8x256xf32>
    %37 = arith.addf %34, %36 : vector<8x256xf32>
    %38 = arith.mulf %37, %37 : vector<8x256xf32>
    %cst_23 = arith.constant dense<0.000000e+00> : vector<8xf32>
    %39 = vector.multi_reduction <add>, %38, %cst_23 [1] : vector<8x256xf32> to vector<8xf32>
    %40 = vector.shape_cast %39 : vector<8xf32> to vector<8x1xf32>
    %cst_24 = arith.constant 2.560000e+02 : f32
    %41 = vector.broadcast %cst_24 : f32 to vector<8x1xf32>
    %42 = arith.divf %40, %41 : vector<8x1xf32>
    %cst_25 = arith.constant 9.99999997E-7 : f32
    %43 = vector.broadcast %cst_25 : f32 to vector<8x1xf32>
    %44 = arith.addf %42, %43 : vector<8x1xf32>
    %45 = math.rsqrt %44 : vector<8x1xf32>
    %46 = vector.broadcast %45 : vector<8x1xf32> to vector<8x256xf32>
    %47 = arith.mulf %37, %46 : vector<8x256xf32>
    %c0_26 = arith.constant 0 : index
    %c0_27 = arith.constant 0 : index
    %48 = vector.load %arg10[%c0_26, %c0_27] : memref<1x256xf32, #tpu.memory_space<vmem>>, vector<1x256xf32>
    %49 = vector.broadcast %48 : vector<1x256xf32> to vector<8x256xf32>
    %50 = arith.mulf %47, %49 : vector<8x256xf32>
    %cst_28 = arith.constant 5.000000e-01 : f32
    %51 = vector.broadcast %cst_28 : f32 to vector<8x256xf32>
    %52 = arith.mulf %51, %50 : vector<8x256xf32>
    %cst_29 = arith.constant 0.707106769 : f32
    %53 = vector.broadcast %cst_29 : f32 to vector<8x256xf32>
    %54 = arith.mulf %50, %53 : vector<8x256xf32>
    %55 = math.erf %54 : vector<8x256xf32>
    %cst_30 = arith.constant 1.000000e+00 : f32
    %56 = vector.broadcast %cst_30 : f32 to vector<8x256xf32>
    %57 = arith.addf %56, %55 : vector<8x256xf32>
    %58 = arith.mulf %52, %57 : vector<8x256xf32>
    %c0_31 = arith.constant 0 : index
    %c0_32 = arith.constant 0 : index
    %59 = vector.load %arg14[%c0_31, %c0_32] : memref<1x256xf32, #tpu.memory_space<vmem>>, vector<1x256xf32>
    %60 = arith.addf %30, %58 : vector<8x256xf32>
    %cst_33 = arith.constant dense<0.000000e+00> : vector<256xf32>
    %61 = vector.multi_reduction <add>, %60, %cst_33 [0] : vector<8x256xf32> to vector<256xf32>
    %62 = vector.shape_cast %61 : vector<256xf32> to vector<1x256xf32>
    %63 = arith.addf %59, %62 : vector<1x256xf32>
    %c0_34 = arith.constant 0 : index
    %c0_35 = arith.constant 0 : index
    %64 = vector.load %arg14[%c0_34, %c0_35] : memref<1x256xf32, #tpu.memory_space<vmem>>, vector<1x256xf32>
    tpu.vector_store %arg14[%c0_34, %c0_35], %63 {strides = array<i32>} : memref<1x256xf32, #tpu.memory_space<vmem>>, vector<1x256xf32>,
    %c0_i32_36 = arith.constant 0 : i32
    %65 = arith.cmpi eq, %arg1, %c0_i32_36 : i32
    %66 = arith.extui %65 : i1 to i32
    %c0_i32_37 = arith.constant 0 : i32
    %67 = arith.cmpi ne, %66, %c0_i32_37 : i32
    scf.if %67 {
      %c0_38 = arith.constant 0 : index
      %c0_39 = arith.constant 0 : index
      %68 = vector.load %arg14[%c0_38, %c0_39] : memref<1x256xf32, #tpu.memory_space<vmem>>, vector<1x256xf32>
      %cst_40 = arith.constant 1.250000e-01 : f32
      %69 = vector.broadcast %cst_40 : f32 to vector<1x256xf32>
      %70 = arith.mulf %68, %69 : vector<1x256xf32>
      %c0_41 = arith.constant 0 : index
      %c0_42 = arith.constant 0 : index
      %71 = vector.load %arg11[%c0_41, %c0_42] : memref<256x128xf32, #tpu.memory_space<vmem>>, vector<256x128xf32>
      %cst_43 = arith.constant dense<0.000000e+00> : vector<1x128xf32>
      %72 = tpu.matmul %70, %71, %cst_43 {dimension_numbers = #tpu.dot_dimension_numbers<[1], [0], [0], [1], [0, 0, 1, 1], [], []>} : vector<1x256xf32>, vector<256x128xf32>, vector<1x128xf32> -> vector<1x128xf32>
      %c0_44 = arith.constant 0 : index
      %c0_45 = arith.constant 0 : index
      %73 = vector.load %arg12[%c0_44, %c0_45] : memref<1x128xf32, #tpu.memory_space<vmem>>, vector<1x128xf32>
      %74 = arith.addf %72, %73 : vector<1x128xf32>
      %c0_46 = arith.constant 0 : index
      %75 = memref.load %arg2[%c0_46] : memref<1xf32, #tpu.memory_space<smem>>
      %cst_47 = arith.constant 1.000000e+00 : f32
      %76 = arith.divf %cst_47, %75 : f32
      %77 = vector.broadcast %76 : f32 to vector<1x128xf32>
      %78 = arith.mulf %74, %77 : vector<1x128xf32>
      %cst_48 = arith.constant dense<0xFF800000> : vector<1xf32>
      %79 = vector.multi_reduction <maximumf>, %78, %cst_48 [1] : vector<1x128xf32> to vector<1xf32>
      %80 = vector.shape_cast %79 : vector<1xf32> to vector<1x1xf32>
      %81 = vector.broadcast %80 : vector<1x1xf32> to vector<1x128xf32>
      %82 = arith.subf %78, %81 : vector<1x128xf32>
      %83 = math.exp %82 : vector<1x128xf32>
      %cst_49 = arith.constant dense<0.000000e+00> : vector<1xf32>
      %84 = vector.multi_reduction <add>, %83, %cst_49 [1] : vector<1x128xf32> to vector<1xf32>
      %85 = vector.shape_cast %84 : vector<1xf32> to vector<1x1xf32>
      %86 = vector.broadcast %85 : vector<1x1xf32> to vector<1x128xf32>
      %87 = arith.divf %83, %86 : vector<1x128xf32>
      %c0_50 = arith.constant 0 : index
      %c0_51 = arith.constant 0 : index
      %c0_52 = arith.constant 0 : index
      %88 = vector.load %arg13[%c0_50, %c0_51, %c0_52] : memref<1x1x128xf32, #tpu.memory_space<vmem>>, vector<1x1x128xf32>
      %89 = vector.shape_cast %88 : vector<1x1x128xf32> to vector<1x128xf32>
      %90 = vector.shape_cast %87 : vector<1x128xf32> to vector<1x1x128xf32>
      tpu.vector_store %arg13[%c0_50, %c0_51, %c0_52], %90 {strides = array<i32>} : memref<1x1x128xf32, #tpu.memory_space<vmem>>, vector<1x1x128xf32>,
    } else {
    }
    return
  }
  func.func @transform_0(%arg0: i32, %arg1: i32) -> i32 {
    %c0_i32 = arith.constant 0 : i32
    %c0_i32_0 = arith.constant 0 : i32
    return %c0_i32 : i32
  }
  func.func @transform_1(%arg0: i32, %arg1: i32) -> (i32, i32, i32) {
    %c0_i32 = arith.constant 0 : i32
    %c0_i32_0 = arith.constant 0 : i32
    return %arg0, %arg1, %c0_i32 : i32, i32, i32
  }
  func.func @transform_2(%arg0: i32, %arg1: i32) -> (i32, i32, i32) {
    %c0_i32 = arith.constant 0 : i32
    %c0_i32_0 = arith.constant 0 : i32
    return %arg0, %arg1, %c0_i32 : i32, i32, i32
  }
  func.func @transform_3(%arg0: i32, %arg1: i32) -> (i32, i32) {
    %c0_i32 = arith.constant 0 : i32
    %c0_i32_0 = arith.constant 0 : i32
    %c0_i32_1 = arith.constant 0 : i32
    return %c0_i32, %c0_i32_0 : i32, i32
  }
  func.func @transform_4(%arg0: i32, %arg1: i32) -> (i32, i32) {
    %c0_i32 = arith.constant 0 : i32
    %c0_i32_0 = arith.constant 0 : i32
    %c0_i32_1 = arith.constant 0 : i32
    return %c0_i32, %c0_i32_0 : i32, i32
  }
  func.func @transform_5(%arg0: i32, %arg1: i32) -> (i32, i32) {
    %c0_i32 = arith.constant 0 : i32
    %c0_i32_0 = arith.constant 0 : i32
    %c0_i32_1 = arith.constant 0 : i32
    return %c0_i32, %c0_i32_0 : i32, i32
  }
  func.func @transform_6(%arg0: i32, %arg1: i32) -> (i32, i32) {
    %c0_i32 = arith.constant 0 : i32
    %c0_i32_0 = arith.constant 0 : i32
    %c0_i32_1 = arith.constant 0 : i32
    return %c0_i32, %c0_i32_0 : i32, i32
  }
  func.func @transform_7(%arg0: i32, %arg1: i32) -> (i32, i32) {
    %c0_i32 = arith.constant 0 : i32
    %c0_i32_0 = arith.constant 0 : i32
    %c0_i32_1 = arith.constant 0 : i32
    return %c0_i32, %c0_i32_0 : i32, i32
  }
  func.func @transform_8(%arg0: i32, %arg1: i32) -> (i32, i32) {
    %c0_i32 = arith.constant 0 : i32
    %c0_i32_0 = arith.constant 0 : i32
    %c0_i32_1 = arith.constant 0 : i32
    return %c0_i32, %c0_i32_0 : i32, i32
  }
  func.func @transform_9(%arg0: i32, %arg1: i32) -> (i32, i32) {
    %c0_i32 = arith.constant 0 : i32
    %c0_i32_0 = arith.constant 0 : i32
    %c0_i32_1 = arith.constant 0 : i32
    return %c0_i32, %c0_i32_0 : i32, i32
  }
  func.func @transform_10(%arg0: i32, %arg1: i32) -> (i32, i32) {
    %c0_i32 = arith.constant 0 : i32
    %c0_i32_0 = arith.constant 0 : i32
    %c0_i32_1 = arith.constant 0 : i32
    return %c0_i32, %c0_i32_0 : i32, i32
  }
  func.func @transform_11(%arg0: i32, %arg1: i32) -> (i32, i32, i32) {
    %c0_i32 = arith.constant 0 : i32
    %c0_i32_0 = arith.constant 0 : i32
    %c0_i32_1 = arith.constant 0 : i32
    return %arg0, %c0_i32, %c0_i32_0 : i32, i32, i32
  }
}

</mosaic_0001>

<bundles_post_ra>
// kernel: mlp_gate_forward.1
= control target key start
LH: loop header
LB: loop body
LE: loop exit
PB: predicated region body
PF: predicated region fallthrough
CT: control target
= control target key end

     0   :  { %s1673_s19 = smov 0   ;;  %s1675_s20 = smov 0   ;;  %s2069_s0 = inlined_call_operand.<no memory space> [shape: f32[1], index: 0, kind: input, shape index: {}]   ;;  %s2070_s1 = inlined_call_operand.vmem [shape: bf16[2,8,256], index: 1, kind: input, shape index: {}]   ;;  %s2071_s2 = inlined_call_operand.vmem [shape: bf16[2,8,256], index: 2, kind: input, shape index: {}]   ;;  %s2072_s3 = inlined_call_operand.vmem [shape: bf16[256,256], index: 3, kind: input, shape index: {}]   ;;  %s2073_s4 = inlined_call_operand.vmem [shape: f32[1,256], index: 4, kind: input, shape index: {}]   ;;  %s2074_s5 = inlined_call_operand.vmem [shape: f32[1,256], index: 5, kind: input, shape index: {}]   ;;  %s2075_s6 = inlined_call_operand.vmem [shape: bf16[256,256], index: 6, kind: input, shape index: {}]   ;;  %s2076_s7 = inlined_call_operand.vmem [shape: f32[1,256], index: 7, kind: input, shape index: {}]   ;;  %s2077_s8 = inlined_call_operand.vmem [shape: f32[1,256], index: 8, kind: input, shape index: {}]   ;;  %s2078_s9 = inlined_call_operand.vmem [shape: f32[256,128], index: 9, kind: input, shape index: {}]   ;;  %s2079_s10 = inlined_call_operand.vmem [shape: f32[1,128], index: 10, kind: input, shape index: {}]   ;;  %s2080_s11 = inlined_call_operand.vmem [shape: f32[2,1,128], index: 11, kind: output, shape index: {}]  }
   0x1   :  { %16 = sst [smem:[#allocation3]] %s2069_s0  ;;  %s1677_s21 = smov 0  }
   0x2 LB: > { %s34_s0 = sadd.s32 1, %s1602_s20  ;;  %p1294_p0 = scmp.ge.s32.totalorder %s1606_s21, 1  ;;  %s1606_s21 = sphi %s1677_s21, %s22_s21   ;;  %s1602_s20 = sphi %s1675_s20, %s2084_s20   ;;  %s1598_s19 = sphi %s1673_s19, %s2083_s19  }
   0x3   : > { %p36_p1 = scmp.ge.s32.totalorder %s34_s0, 2  ;;  %p372_p2 = scmp.lt.s32.totalorder %s1606_s21, 3 }
   0x5   : > { %s2086_s0 = smov (%p36_p1, %s34_s0), 0  ;;  %p373_p3 = pnand %p1294_p0, %p372_p2 }
   0x6   : > { %v1466_v0 = vld [vmem:[%s2072_s3 + $0x4] ss:$8 sps:$4 sm:$0xff] (!%p373_p3)   ;;  %v1468_v1 = vld [vmem:[%s2072_s3] ss:$8 sps:$4 sm:$0xff] (!%p373_p3)   ;;  %v448_v2 = vlaneseq (!%p373_p3)  ;;  %v1472_v5 = vld [vmem:[%s2072_s3 + $0x14] ss:$8 sps:$4 sm:$0xff] (!%p373_p3)  }
   0x7   : > { %376 = sbr.rel (%p373_p3) target bundleno = 1042 (0x412), region = 64  ;;  %665 = vmatprep.subr.bf16.mxu0 (!%p373_p3), %v1466_v0  ;;  %v1469_v3 = vld [vmem:[%s2075_s6 + $0x4] ss:$8 sps:$4 sm:$0xff] (!%p373_p3)   ;;  %v1471_v4 = vld [vmem:[%s2075_s6] ss:$8 sps:$4 sm:$0xff] (!%p373_p3)   ;;  %v1608_v9 = vmov (!%p373_p3), 0.0  }
   0x8   : > { %666 = vmatpush1.bf16.msra.mxu0 (!%p373_p3), %v1468_v1  ;;  %v1474_v6 = vld [vmem:[%s2072_s3 + $0x10] ss:$8 sps:$4 sm:$0xff] (!%p373_p3)   ;;  %vm1712_vm0 = vcmp.lt.s32.totalorder (!%p373_p3), %v448_v2, 256  ;;  %953 = vmatprep.subr.bf16.mxu1 (!%p373_p3), %v1469_v3  ;;  %v1475_v8 = vld [vmem:[%s2075_s6 + $0x14] ss:$8 sps:$4 sm:$0xff] (!%p373_p3)   ;;  %p423_p4 = scmp.lt.s32.totalorder (!%p373_p3), %s1598_s19, 1 }
   0x9   : > { %452 = vst.msk [vmem:[#allocation2] sm:$0x3] (!%p373_p3), %vm1712_vm0, %v1608_v9  ;;  %954 = vmatpush1.bf16.msra.mxu1 (!%p373_p3), %v1471_v4  ;;  %667 = vmatprep.subr.bf16.mxu0 (!%p373_p3), %v1472_v5  ;;  %v1477_v10 = vld [vmem:[%s2075_s6 + $0x10] ss:$8 sps:$4 sm:$0xff] (!%p373_p3)   ;;  %v1478_v11 = vld [vmem:[%s2072_s3 + $0x24] ss:$8 sps:$4 sm:$0xff] (!%p373_p3)  }
   0xa   : > { %955 = vmatprep.subr.bf16.mxu1 (!%p373_p3), %v1475_v8  ;;  %v1480_v12 = vld [vmem:[%s2072_s3 + $0x20] ss:$8 sps:$4 sm:$0xff] (!%p373_p3)   ;;  %v1481_v13 = vld [vmem:[%s2075_s6 + $0x24] ss:$8 sps:$4 sm:$0xff] (!%p373_p3)   ;;  %v1484_v14 = vld [vmem:[%s2072_s3 + $0x34] ss:$8 sps:$4 sm:$0xff] (!%p373_p3)  }
   0xb   : > { %v1483_v15 = vld [vmem:[%s2075_s6 + $0x20] ss:$8 sps:$4 sm:$0xff] (!%p373_p3)   ;;  %v1487_v16 = vld [vmem:[%s2075_s6 + $0x34] ss:$8 sps:$4 sm:$0xff] (!%p373_p3)   ;;  %v1486_v17 = vld [vmem:[%s2072_s3 + $0x30] ss:$8 sps:$4 sm:$0xff] (!%p373_p3)  }
   0xc   : > { %668 = vmatpush1.bf16.msra.mxu0 (!%p373_p3), %v1474_v6  ;;  %v1490_v18 = vld [vmem:[%s2072_s3 + $0x44] ss:$8 sps:$4 sm:$0xff] (!%p373_p3)   ;;  %v1489_v19 = vld [vmem:[%s2075_s6 + $0x30] ss:$8 sps:$4 sm:$0xff] (!%p373_p3)   ;;  %v1492_v21 = vld [vmem:[%s2072_s3 + $0x40] ss:$8 sps:$4 sm:$0xff] (!%p373_p3)  }
   0xd   : > { %669 = vmatprep.subr.bf16.mxu0 (!%p373_p3), %v1478_v11  ;;  %956 = vmatpush1.bf16.msra.mxu1 (!%p373_p3), %v1477_v10  ;;  %v1493_v20 = vld [vmem:[%s2075_s6 + $0x44] ss:$8 sps:$4 sm:$0xff] (!%p373_p3)   ;;  %v1496_v22 = vld [vmem:[%s2072_s3 + $0x54] ss:$8 sps:$4 sm:$0xff] (!%p373_p3)   ;;  %v1495_v23 = vld [vmem:[%s2075_s6 + $0x40] ss:$8 sps:$4 sm:$0xff] (!%p373_p3)  }
   0xe   : > { %957 = vmatprep.subr.bf16.mxu1 %v1481_v13  ;;  %v1499_v24 = vld [vmem:[%s2075_s6 + $0x54] ss:$8 sps:$4 sm:$0xff]   ;;  %v1498_v25 = vld [vmem:[%s2072_s3 + $0x50] ss:$8 sps:$4 sm:$0xff]   ;;  %v1502_v26 = vld [vmem:[%s2072_s3 + $0x64] ss:$8 sps:$4 sm:$0xff]  }
   0xf   : > { %v1501_v27 = vld [vmem:[%s2075_s6 + $0x50] ss:$8 sps:$4 sm:$0xff]   ;;  %v1505_v28 = vld [vmem:[%s2075_s6 + $0x64] ss:$8 sps:$4 sm:$0xff]   ;;  %v1504_v29 = vld [vmem:[%s2072_s3 + $0x60] ss:$8 sps:$4 sm:$0xff]  }
  0x10   : > { %670 = vmatpush1.bf16.msra.mxu0 %v1480_v12  ;;  %v1508_v30 = vld [vmem:[%s2072_s3 + $0x74] ss:$8 sps:$4 sm:$0xff]   ;;  %v1507_v31 = vld [vmem:[%s2075_s6 + $0x60] ss:$8 sps:$4 sm:$0xff]   ;;  %v1510_v33 = vld [vmem:[%s2072_s3 + $0x70] ss:$8 sps:$4 sm:$0xff]  }
  0x11   : > { %671 = vmatprep.subr.bf16.mxu0 %v1484_v14  ;;  %958 = vmatpush1.bf16.msra.mxu1 %v1483_v15  ;;  %v1511_v32 = vld [vmem:[%s2075_s6 + $0x74] ss:$8 sps:$4 sm:$0xff]   ;;  %v1514_v34 = vld [vmem:[%s2072_s3 + $0x84] ss:$8 sps:$4 sm:$0xff]   ;;  %v1513_v35 = vld [vmem:[%s2075_s6 + $0x70] ss:$8 sps:$4 sm:$0xff]  }
  0x12   : > { %959 = vmatprep.subr.bf16.mxu1 %v1487_v16  ;;  %v1517_v36 = vld [vmem:[%s2075_s6 + $0x84] ss:$8 sps:$4 sm:$0xff]   ;;  %v1516_v37 = vld [vmem:[%s2072_s3 + $0x80] ss:$8 sps:$4 sm:$0xff]   ;;  %v1520_v38 = vld [vmem:[%s2072_s3 + $0x94] ss:$8 sps:$4 sm:$0xff]  }
  0x13   : > { %s2088_s19 = smov (!%p423_p4, %s1598_s19), 1  ;;  %v1519_v39 = vld [vmem:[%s2075_s6 + $0x80] ss:$8 sps:$4 sm:$0xff]   ;;  %v1523_v40 = vld [vmem:[%s2075_s6 + $0x94] ss:$8 sps:$4 sm:$0xff]   ;;  %v1904_v11 = vshrl.u32 %v448_v2, 7 }
  0x14   : > { %672 = vmatpush1.bf16.msra.mxu0 %v1486_v17  ;;  %v1522_v41 = vld [vmem:[%s2072_s3 + $0x90] ss:$8 sps:$4 sm:$0xff]   ;;  %v1526_v42 = vld [vmem:[%s2072_s3 + $0xa4] ss:$8 sps:$4 sm:$0xff]   ;;  %s1369_s22 = sshll.u32 %s2088_s19, 3  ;;  %s1186_s14 = sld [smem:[#allocation3]] }
  0x15   : > { %673 = vmatprep.subr.bf16.mxu0 %v1490_v18  ;;  %960 = vmatpush1.bf16.msra.mxu1 %v1489_v19  ;;  %v1525_v43 = vld [vmem:[%s2075_s6 + $0x90] ss:$8 sps:$4 sm:$0xff]   ;;  %v1529_v44 = vld [vmem:[%s2075_s6 + $0xa4] ss:$8 sps:$4 sm:$0xff]   ;;  %v1528_v45 = vld [vmem:[%s2072_s3 + $0xa0] ss:$8 sps:$4 sm:$0xff]   ;;  %s431_s12 = scalar_lea.vmem %s2070_s1, %s1369_s22  ;;  %s440_s17 = scalar_lea.vmem %s2071_s2, %s1369_s22 }
  0x16   : > { %961 = vmatprep.subr.bf16.mxu1 %v1493_v20  ;;  %v1532_v46 = vld [vmem:[%s2072_s3 + $0xb4] ss:$8 sps:$4 sm:$0xff]   ;;  %v1531_v47 = vld [vmem:[%s2075_s6 + $0xa0] ss:$8 sps:$4 sm:$0xff]   ;;  %v1534_v50 = vld [vmem:[%s2072_s3 + $0xb0] ss:$8 sps:$4 sm:$0xff]   ;;  %s443_s22 = scalar_lea.vmem %s2080_s11, %s2088_s19 }
  0x17   : > { %v1535_v48 = vld [vmem:[%s2075_s6 + $0xb4] ss:$8 sps:$4 sm:$0xff]   ;;  %v453_v49 = vld [vmem:[%s431_s12] sm:$0xff]  ;;  %v1537_v55 = vld [vmem:[%s2075_s6 + $0xb0] ss:$8 sps:$4 sm:$0xff]   ;;  %v1907_v12 = vsub.s32 0, %v1904_v11 }
  0x18   : > { %674 = vmatpush1.bf16.msra.mxu0 %v1492_v21  ;;  %v1300_v51 = vcombine.high %v453_v49, %v453_v49  ;;  %v741_v52 = vld [vmem:[%s440_s17] sm:$0xff]  ;;  %v1544_v58 = vld [vmem:[%s2072_s3 + $0xd4] ss:$8 sps:$4 sm:$0xff]   ;;  %v1546_v61 = vld [vmem:[%s2072_s3 + $0xd0] ss:$8 sps:$4 sm:$0xff]   ;;  %v1299_v9 = vcombine.low %v453_v49, %v453_v49  ;;  %v1913_v14 = vsub.s32 1, %v1904_v11 }
  0x19   : > { %675 = vmatprep.subr.bf16.mxu0 %v1496_v22  ;;  %962 = vmatpush1.bf16.msra.mxu1 %v1495_v23  ;;  %v1538_v53 = vld [vmem:[%s2072_s3 + $0xc4] ss:$8 sps:$4 sm:$0xff]   ;;  %v1334_v54 = vcombine.high %v741_v52, %v741_v52  ;;  %v1540_v57 = vld [vmem:[%s2072_s3 + $0xc0] ss:$8 sps:$4 sm:$0xff]   ;;  %v1547_v60 = vld [vmem:[%s2075_s6 + $0xd4] ss:$8 sps:$4 sm:$0xff]   ;;  %v1333_v10 = vcombine.low %v741_v52, %v741_v52 }
  0x1a   : > { %963 = vmatprep.subr.bf16.mxu1 %v1499_v24  ;;  %697 = vmatprep.mubr.bf16.mxu0 %v1300_v51  ;;  %v1541_v56 = vld [vmem:[%s2075_s6 + $0xc4] ss:$8 sps:$4 sm:$0xff]   ;;  %v1543_v59 = vld [vmem:[%s2075_s6 + $0xc0] ss:$8 sps:$4 sm:$0xff]   ;;  %v1549_v63 = vld [vmem:[%s2075_s6 + $0xd0] ss:$8 sps:$4 sm:$0xff]  }
  0x1b   : > { %985 = vmatprep.mubr.bf16.mxu1 %v1334_v54  ;;  %v1550_v62 = vld [vmem:[%s2072_s3 + $0xe4] ss:$8 sps:$4 sm:$0xff]   ;;  %v1552_v1 = vld [vmem:[%s2072_s3 + $0xe0] ss:$8 sps:$4 sm:$0xff]   ;;  %v1556_v3 = vld [vmem:[%s2072_s3 + $0xf4] ss:$8 sps:$4 sm:$0xff]  }
  0x1c   : > { %676 = vmatpush1.bf16.msra.mxu0 %v1498_v25  ;;  %v1553_v0 = vld [vmem:[%s2075_s6 + $0xe4] ss:$8 sps:$4 sm:$0xff]   ;;  %v1555_v4 = vld [vmem:[%s2075_s6 + $0xe0] ss:$8 sps:$4 sm:$0xff]   ;;  %v1559_v5 = vld [vmem:[%s2075_s6 + $0xf4] ss:$8 sps:$4 sm:$0xff]  }
  0x1d   : > { %677 = vmatprep.subr.bf16.mxu0 %v1502_v26  ;;  %964 = vmatpush1.bf16.msra.mxu1 %v1501_v27  ;;  %v1558_v6 = vld [vmem:[%s2072_s3 + $0xf0] ss:$8 sps:$4 sm:$0xff]   ;;  %v486_v13 = vld [vmem:[%s2073_s4] sm:$0x3]  ;;  %vm1192_vm1 = vcmask 1040384  }
  0x1e   : > { %965 = vmatprep.subr.bf16.mxu1 %v1505_v28  ;;  %v1561_v8 = vld [vmem:[%s2075_s6 + $0xf0] ss:$8 sps:$4 sm:$0xff]   ;;  %v774_v15 = vld [vmem:[%s2076_s7] sm:$0x3]  ;;  %v491_v16 = vrot.slane %v486_v13, %v1907_v12  ;;  %v495_v17 = vrot.slane %v486_v13, %v1913_v14 }
  0x1f   : > { %v779_v2 = vrot.slane %v774_v15, %v1907_v12  ;;  %v783_v19 = vrot.slane %v774_v15, %v1913_v14  ;;  %v1092_v49 = vld [vmem:[%s2078_s9 + $0xa0] sm:$0xff]  ;;  %v1101_v15 = vld [vmem:[%s2078_s9 + $0xe8] sm:$0xff] }
  0x20   : > { %678 = vmatpush1.bf16.msra.mxu0 %v1504_v29  ;;  %v1076_v52 = vld [vmem:[%s2078_s9 + $0x20] sm:$0xff] }
  0x21   : > { %679 = vmatprep.subr.bf16.mxu0 %v1508_v30  ;;  %966 = vmatpush1.bf16.msra.mxu1 %v1507_v31  ;;  %v1100_v13 = vld [vmem:[%s2078_s9 + $0xe0] sm:$0xff] }
  0x22   : > { %967 = vmatprep.subr.bf16.mxu1 %v1511_v32 }
  0x24   : > { %680 = vmatpush1.bf16.msra.mxu0 %v1510_v33 }
  0x25   : > { %681 = vmatprep.subr.bf16.mxu0 %v1514_v34  ;;  %968 = vmatpush1.bf16.msra.mxu1 %v1513_v35 }
  0x26   : > { %969 = vmatprep.subr.bf16.mxu1 %v1517_v36 }
  0x28   : > { %682 = vmatpush1.bf16.msra.mxu0 %v1516_v37  ;;  %v1088_v37 = vld [vmem:[%s2078_s9 + $0x80] sm:$0xff] }
  0x29   : > { %683 = vmatprep.subr.bf16.mxu0 %v1520_v38  ;;  %970 = vmatpush1.bf16.msra.mxu1 %v1519_v39  ;;  %v1089_v38 = vld [vmem:[%s2078_s9 + $0x88] sm:$0xff] }
  0x2a   : > { %971 = vmatprep.subr.bf16.mxu1 %v1523_v40  ;;  %v1406_v39 = vpack.c.bf16 %v1089_v38, %v1088_v37  ;;  %v1072_v40 = vld [vmem:[%s2078_s9] sm:$0xff] }
  0x2b   : > { %v717_v37 = vld [vmem:[%s2074_s5] sm:$0x3] }
  0x2c   : > { %684 = vmatpush1.bf16.msra.mxu0 %v1522_v41  ;;  %v1073_v41 = vld [vmem:[%s2078_s9 + $0x8] sm:$0xff]  ;;  %v722_v38 = vrot.slane %v717_v37, %v1907_v12 }
  0x2d   : > { %685 = vmatprep.subr.bf16.mxu0 %v1526_v42  ;;  %972 = vmatpush1.bf16.msra.mxu1 %v1525_v43  ;;  %v1408_v42 = vpack.c.bf16 %v1073_v41, %v1072_v40  ;;  %v1090_v43 = vld [vmem:[%s2078_s9 + $0x90] sm:$0xff] }
  0x2e   : > { %973 = vmatprep.subr.bf16.mxu1 %v1529_v44  ;;  %v1091_v44 = vld [vmem:[%s2078_s9 + $0x98] sm:$0xff] }
  0x30   : > { %686 = vmatpush1.bf16.msra.mxu0 %v1528_v45  ;;  %v1410_v45 = vpack.c.bf16 %v1091_v44, %v1090_v43  ;;  %v1004_v43 = vld [vmem:[%s2077_s8] sm:$0x3] }
  0x31   : > { %687 = vmatprep.subr.bf16.mxu0 %v1532_v46  ;;  %974 = vmatpush1.bf16.msra.mxu1 %v1531_v47  ;;  %v1074_v46 = vld [vmem:[%s2078_s9 + $0x10] sm:$0xff]  ;;  %v1075_v47 = vld [vmem:[%s2078_s9 + $0x18] sm:$0xff] }
  0x32   : > { %975 = vmatprep.subr.bf16.mxu1 %v1535_v48  ;;  %v1412_v48 = vpack.c.bf16 %v1075_v47, %v1074_v46  ;;  %v1009_v47 = vrot.slane %v1004_v43, %v1907_v12 }
  0x34   : > { %688 = vmatpush1.bf16.msra.mxu0 %v1534_v50  ;;  %v1093_v50 = vld [vmem:[%s2078_s9 + $0xa8] sm:$0xff] }
  0x35   : > { %689 = vmatprep.subr.bf16.mxu0 %v1538_v53  ;;  %976 = vmatpush1.bf16.msra.mxu1 %v1537_v55  ;;  %v1414_v51 = vpack.c.bf16 %v1093_v50, %v1092_v49  ;;  %v1077_v53 = vld [vmem:[%s2078_s9 + $0x28] sm:$0xff]  ;;  %v1094_v55 = vld [vmem:[%s2078_s9 + $0xb0] sm:$0xff] }
  0x36   : > { %977 = vmatprep.subr.bf16.mxu1 %v1541_v56  ;;  %v1416_v54 = vpack.c.bf16 %v1077_v53, %v1076_v52  ;;  %v1095_v56 = vld [vmem:[%s2078_s9 + $0xb8] sm:$0xff] }
  0x38   : > { %690 = vmatpush1.bf16.msra.mxu0 %v1540_v57  ;;  %v1418_v57 = vpack.c.bf16 %v1095_v56, %v1094_v55 }
  0x39   : > { %691 = vmatprep.subr.bf16.mxu0 %v1544_v58  ;;  %978 = vmatpush1.bf16.msra.mxu1 %v1543_v59  ;;  %v1078_v58 = vld [vmem:[%s2078_s9 + $0x30] sm:$0xff]  ;;  %v1079_v59 = vld [vmem:[%s2078_s9 + $0x38] sm:$0xff] }
  0x3a   : > { %979 = vmatprep.subr.bf16.mxu1 %v1547_v60  ;;  %v1420_v60 = vpack.c.bf16 %v1079_v59, %v1078_v58 }
  0x3c   : > { %692 = vmatpush1.bf16.msra.mxu0 %v1546_v61  ;;  %v1096_v61 = vld [vmem:[%s2078_s9 + $0xc0] sm:$0xff] }
  0x3d   : > { %693 = vmatprep.subr.bf16.mxu0 %v1550_v62  ;;  %980 = vmatpush1.bf16.msra.mxu1 %v1549_v63  ;;  %v1097_v62 = vld [vmem:[%s2078_s9 + $0xc8] sm:$0xff] }
  0x3e   : > { %981 = vmatprep.subr.bf16.mxu1 %v1553_v0  ;;  %v1422_v63 = vpack.c.bf16 %v1097_v62, %v1096_v61  ;;  %v1080_v0 = vld [vmem:[%s2078_s9 + $0x40] sm:$0xff] }
  0x40   : > { %694 = vmatpush1.bf16.msra.mxu0 %v1552_v1  ;;  %v1081_v1 = vld [vmem:[%s2078_s9 + $0x48] sm:$0xff] }
  0x41   : > { %695 = vmatprep.subr.bf16.mxu0 %v1556_v3  ;;  %982 = vmatpush1.bf16.msra.mxu1 %v1555_v4  ;;  %v1424_v3 = vpack.c.bf16 %v1081_v1, %v1080_v0  ;;  %v1098_v4 = vld [vmem:[%s2078_s9 + $0xd0] sm:$0xff] }
  0x42   : > { %983 = vmatprep.subr.bf16.mxu1 %v1559_v5  ;;  %v1099_v5 = vld [vmem:[%s2078_s9 + $0xd8] sm:$0xff] }
  0x44   : > { %696 = vmatpush1.bf16.msra.mxu0 %v1558_v6  ;;  %v1426_v6 = vpack.c.bf16 %v1099_v5, %v1098_v4 }
  0x45   : > { %984 = vmatpush1.bf16.msra.mxu1 %v1561_v8  ;;  %1407 = vmatprep.subr.bf16.mxu0 %v1406_v39  ;;  %v1082_v8 = vld [vmem:[%s2078_s9 + $0x50] sm:$0xff]  ;;  %v726_v39 = vrot.slane %v717_v37, %v1913_v14 }
  0x47   : > { %698 = vmatmul.mubr.bf16.vlgmr.msra.gmra.mrb[0].mxu0 %v1299_v9  ;;  %v1083_v9 = vld [vmem:[%s2078_s9 + $0x58] sm:$0xff] }
  0x48   : > { %986 = vmatmul.mubr.bf16.vlgmr.msra.gmra.mrb[0].mxu1 %v1333_v10  ;;  %1409 = vmatpush3.bf16.msra.mxu0 %v1408_v42  ;;  %v1428_v10 = vpack.c.bf16 %v1083_v9, %v1082_v8 }
  0x49   : > { %1411 = vmatprep.subr.bf16.mxu0 %v1410_v45 }
  0x4c   : > { %1413 = vmatpush3.bf16.msra.mxu0 %v1412_v48  ;;  %v1013_v48 = vrot.slane %v1004_v43, %v1913_v14 }
  0x4d   : > { %1415 = vmatprep.subr.bf16.mxu0 %v1414_v51 }
  0x50   : > { %1417 = vmatpush3.bf16.msra.mxu0 %v1416_v54 }
  0x51   : > { %1419 = vmatprep.subr.bf16.mxu0 %v1418_v57 }
  0x54   : > { %1421 = vmatpush3.bf16.msra.mxu0 %v1420_v60 }
  0x55   : > { %1423 = vmatprep.subr.bf16.mxu0 %v1422_v63 }
  0x58   : > { %1425 = vmatpush3.bf16.msra.mxu0 %v1424_v3 }
  0x59   : > { %1427 = vmatprep.subr.bf16.mxu0 %v1426_v6 }
  0x5c   : > { %1429 = vmatpush3.bf16.msra.mxu0 %v1428_v10 }
 0x11a   : > { %v699_v18 = vpop.f32.mrb[0].mxu0 }
 0x11b   : > { %v1922_v20 = vadd.f32 %v699_v18, %v491_v16  ;;  %v701_v21 = vpop.f32.mrb[1].mxu0  ;;  %v987_v23 = vpop.f32.mrb[0].mxu1  ;;  %v1084_v16 = vld [vmem:[%s2078_s9 + $0x60] sm:$0xff]  ;;  %v1102_v18 = vld [vmem:[%s2078_s9 + $0xf0] sm:$0xff] }
 0x11c   : > { %v1924_v22 = vadd.f32 %v701_v21, %v495_v17  ;;  %v703_v24 = vpop.f32.mrb[2].mxu0  ;;  %v1926_v25 = vadd.f32 %v987_v23, %v779_v2  ;;  %v989_v26 = vpop.f32.mrb[1].mxu1  ;;  %v1430_v17 = vpack.c.bf16 %v1101_v15, %v1100_v13  ;;  %v1085_v2 = vld [vmem:[%s2078_s9 + $0x68] sm:$0xff]  ;;  %v1609_v15 = vmov 1966171168  }
 0x11d   : > { %v704_v27 = vpop.f32.mrb[3].mxu0  ;;  %v706_v28 = vmul.f32 %v1922_v20, %v1922_v20  ;;  %v1930_v29 = vadd.f32 %v989_v26, %v783_v19  ;;  %v991_v30 = vpop.f32.mrb[2].mxu1  ;;  %v1103_v19 = vld [vmem:[%s2078_s9 + $0xf8] sm:$0xff]  ;;  %v1432_v21 = vpack.c.bf16 %v1085_v2, %v1084_v16  ;;  %v1086_v24 = vld [vmem:[%s2078_s9 + $0x70] sm:$0xff]  ;;  %v1047_v16 = vunpack.c.l.s4 %v1609_v15 }
 0x11e   : > { %v707_v31 = vmul.f32 %v1924_v22, %v1924_v22  ;;  %v994_v32 = vmul.f32 %v1926_v25, %v1926_v25  ;;  %v992_v33 = vpop.f32.mrb[3].mxu1  ;;  %1431 = vmatprep.subr.bf16.mxu0 %v1430_v17  ;;  %v1434_v23 = vpack.c.bf16 %v1103_v19, %v1102_v18  ;;  %v1087_v26 = vld [vmem:[%s2078_s9 + $0x78] sm:$0xff] }
 0x11f   : > { %v995_v34 = vmul.f32 %v1930_v29, %v1930_v29  ;;  %1433 = vmatpush3.bf16.msra.mxu0 %v1432_v21  ;;  %v1436_v27 = vpack.c.bf16 %v1087_v26, %v1086_v24  ;;  %v1048_v21 = vunpack.c.0.s8 %v1047_v16 }
 0x120   : > { %v708_v35 = vadd.f32 %v707_v31, %v706_v28  ;;  %1435 = vmatprep.subr.bf16.mxu0 %v1434_v23  ;;  %v1187_v28 = vstv %s1186_s14 }
 0x121   : > { %v996_v36 = vadd.f32 %v995_v34, %v994_v32  ;;  %1566 = vrcp.f32 %v1187_v28  ;;  %v1051_v28 = vsub.s32 %v1048_v21, %v1904_v11  ;;  %v1104_v11 = vld [vmem:[%s2079_s10] sm:$0x1] }
 0x122   : > { %709 = vadd.xlane.f32.xlu0 %v708_v35 }
 0x123   : > { %1437 = vmatpush3.bf16.msra.mxu0 %v1436_v27 }
 0x126   : > { %997 = vadd.xlane.f32.xlu0 %v996_v36 }
 0x12b   : > { %v1567_v30 = vpop.eup %1566 }
 0x12c   : > { %1438 = vpush %v1567_v30 }
 0x15d   : > { %s1439_s23 = spop %1438 }
 0x15e   : > { %v1190_v43 = vstv %s1439_s23 }
 0x1af   : > { %v710_v31 = vpop.xlane.xlu0 %709 }
 0x1b0   : > { %v712_v32 = vmul.f32 0.00390625, %v710_v31 }
 0x1b2   : > { %v713_v33 = vadd.f32 1e-06, %v712_v32 }
 0x1b3   : > { %v998_v34 = vpop.xlane.xlu0 %997 }
 0x1b4   : > { %1568 = vrsqrt.f32 %v713_v33  ;;  %v999_v35 = vmul.f32 0.00390625, %v998_v34  ;;  %v1028_v33 = vld [vmem:[#allocation2] sm:$0x3] }
 0x1b6   : > { %v1000_v36 = vadd.f32 1e-06, %v999_v35 }
 0x1b8   : > { %1570 = vrsqrt.f32 %v1000_v36 }
 0x1be   : > { %v1569_v40 = vpop.eup %1568 }
 0x1bf   : > { %v715_v41 = vmul.f32 %v1569_v40, %v1922_v20  ;;  %v716_v42 = vmul.f32 %v1569_v40, %v1924_v22 }
 0x1c1   : > { %v729_v44 = vmul.f32 %v722_v38, %v715_v41  ;;  %v730_v45 = vmul.f32 %v726_v39, %v716_v42 }
 0x1c2   : > { %v1571_v46 = vpop.eup %1570 }
 0x1c3   : > { %v733_v49 = vmul.f32 0.70710677, %v729_v44  ;;  %v734_v50 = vmul.f32 0.70710677, %v730_v45  ;;  %v1002_v51 = vmul.f32 %v1571_v46, %v1926_v25  ;;  %v1003_v52 = vmul.f32 %v1571_v46, %v1930_v29 }
 0x1c4   : > { %v731_v61 = vmul.f32 0.5, %v729_v44  ;;  %v732_v25 = vmul.f32 0.5, %v730_v45 }
 0x1c5   : > { %1572 = verf.f32 %v733_v49  ;;  %v1016_v20 = vmul.f32 %v1009_v47, %v1002_v51  ;;  %v1017_v22 = vmul.f32 %v1013_v48, %v1003_v52 }
 0x1c6   : > { %1574 = verf.f32 %v734_v50 }
 0x1c7   : > { %v1020_v53 = vmul.f32 0.70710677, %v1016_v20  ;;  %v1021_v54 = vmul.f32 0.70710677, %v1017_v22  ;;  %v1018_v62 = vmul.f32 0.5, %v1016_v20  ;;  %v1019_v0 = vmul.f32 0.5, %v1017_v22 }
 0x1c9   : > { %1576 = verf.f32 %v1020_v53 }
 0x1ca   : > { %1578 = verf.f32 %v1021_v54 }
 0x1cf   : > { %v1573_v55 = vpop.eup %1572 }
 0x1d0   : > { %v1575_v56 = vpop.eup %1574  ;;  %v737_v57 = vadd.f32 1.0, %v1573_v55 }
 0x1d1   : > { %v738_v59 = vadd.f32 1.0, %v1575_v56 }
 0x1d2   : > { %v739_v1 = vmul.f32 %v737_v57, %v731_v61 }
 0x1d3   : > { %v1577_v58 = vpop.eup %1576  ;;  %v740_v4 = vmul.f32 %v738_v59, %v732_v25 }
 0x1d4   : > { %v1579_v60 = vpop.eup %1578  ;;  %v1024_v63 = vadd.f32 1.0, %v1577_v58 }
 0x1d5   : > { %v1025_v29 = vadd.f32 1.0, %v1579_v60 }
 0x1d6   : > { %v1026_v3 = vmul.f32 %v1024_v63, %v1018_v62 }
 0x1d7   : > { %v1027_v5 = vmul.f32 %v1025_v29, %v1019_v0 }
 0x1d8   : > { %v1029_v6 = vadd.f32 %v1026_v3, %v739_v1 }
 0x1d9   : > { %v1030_v8 = vadd.f32 %v1027_v5, %v740_v4 }
 0x1da   : > { %v1031_v9 = vrot.slane %v1029_v6, 4 }
 0x1db   : > { %v1037_v10 = vrot.slane %v1030_v8, 4 }
 0x1dc   : > { %v1032_v13 = vadd.f32 %v1031_v9, %v1029_v6 }
 0x1dd   : > { %v1038_v17 = vadd.f32 %v1037_v10, %v1030_v8 }
 0x1de   : > { %v1033_v2 = vrot.slane %v1032_v13, 2 }
 0x1df   : > { %v1039_v18 = vrot.slane %v1038_v17, 2 }
 0x1e0   : > { %v1034_v19 = vadd.f32 %v1033_v2, %v1032_v13 }
 0x1e1   : > { %v1040_v23 = vadd.f32 %v1039_v18, %v1038_v17 }
 0x1e2   : > { %v1035_v24 = vrot.slane %v1034_v19, 1 }
 0x1e3   : > { %v1041_v26 = vrot.slane %v1040_v23, 1 }
 0x1e4   : > { %v1036_v27 = vadd.f32 %v1035_v24, %v1034_v19 }
 0x1e5   : > { %v1042_v30 = vadd.f32 %v1041_v26, %v1040_v23 }
 0x1e7   : > { %v1045_v31 = vcombine.low %v1036_v27, %v1042_v30 }
 0x1e9   : > { %v1052_v32 = vrot.slane %v1045_v31, %v1051_v28 }
 0x1eb   : > { %v1059_v34 = vrot.slane %v1052_v32, %v1051_v28 }
 0x1ed   : > { %v1061_v35 = vadd.f32 %v1059_v34, %v1028_v33 }
 0x1ef   : > { %1066 = vst.msk [vmem:[#allocation2] sm:$0x3] %vm1712_vm0, %v1061_v35 }
 0x1f6   : > { %v1070_v36 = vld [vmem:[#allocation2] sm:$0x3] }
 0x1f7   : > { %v1071_v37 = vmul.f32 0.125, %v1070_v36 }
 0x1f9   : > { %v1113_v38 = vrot.slane %v1071_v37, %v1913_v14  ;;  %v1109_v39 = vrot.slane %v1071_v37, %v1907_v12 }
 0x1fb   : > { %1180 = vmatprep.mubr.f32.mxu0 %v1113_v38 }
 0x1fc   : > { %1181 = vmatmul.mubr.f32.vlgmr.msra.gmra.mrb[4].mxu0 %v1109_v39 }
 0x2cf   : > { %v1403_v40 = vpop.f32.mrb[4].mxu0 }
 0x2d0   : > { %v1404_v41 = vpop.f32.mrb[5].mxu0 }
 0x2d1   : > { %v1405_v42 = vadd.f32 %v1404_v41, %v1403_v40 }
 0x2d3   : > { %v1183_v7 = vadd.f32 %v1405_v42, %v1104_v11 }
 0x2d5   : > { %v1191_v44 = vmul.f32 %v1190_v43, %v1183_v7 }
 0x2d7   : > { %v1193_v45 = vsel %vm1192_vm1, %v1191_v44, -inf }
 0x2d8   : > { %1194 = vmax.xlane.f32.xlu1 %v1193_v45 }
 0x365   : > { %v1195_v14 = vpop.xlane.xlu1 %1194 }
 0x366   : > { %v1196_v46 = vsub.f32 %v1191_v44, %v1195_v14 }
 0x368   : > { %v1197_v12 = vmul.f32 1.442695, %v1196_v46 }
 0x36a   : > { %1580 = vpow2.f32 %v1197_v12 }
 0x374   : > { %v1581_v47 = vpop.eup %1580 }
 0x375   : > { %v1199_v48 = vsel %vm1192_vm1, %v1581_v47, 0.0 }
 0x376   : > { %1200 = vadd.xlane.f32.xlu1 %v1199_v48 }
 0x403   : > { %v1201_v49 = vpop.xlane.xlu1 %1200 }
 0x404   : > { %1582 = vrcp.f32 %v1201_v49 }
 0x40e   : > { %v1583_v50 = vpop.eup %1582 }
 0x40f   : > { %v1203_v51 = vmul.f32 %v1583_v50, %v1581_v47 }
 0x411   : > { %1204 = vst [vmem:[%s443_s22] sm:$0x1] %v1203_v51 }
 0x412 PF: > { %s22_s21 = sadd.s32 1, %s1606_s21   ;;  %s2083_s19 = smov %s1602_s20 }
 0x413   : > { %p19_p5 = scmp.ge.s32.totalorder %s22_s21, 4   ;;  %s2084_s20 = smov %s2086_s0 }
 0x415   :  { %21 = sbr.rel (!%p19_p5) target bundleno = 2 (0x2), region = 105 }

</bundles_post_ra>
